<compile_context>
chip_gen: v5e
topology: v5e:2x2
jax: 0.10.0
libtpu: 0.0.40
codegen_flags: <defaults>
</compile_context>

<pallas_src>
import functools

import jax
import jax.numpy as jnp
from jax.experimental import pallas as pl
from jax.experimental.pallas import tpu as pltpu

_LANE = 128


def _round_up(n, m):
    return ((n + m - 1) // m) * m


# --------------------------- fused forward kernel ---------------------------
def _rqvae_kernel(*refs, n_enc, n_dec, n_levels, e_dim):
    """Fused encoder MLP -> residual VQ -> decoder MLP for one batch tile."""
    pos = 0
    x_ref = refs[pos]; pos += 1
    enc = [(refs[pos + 2 * i], refs[pos + 2 * i + 1]) for i in range(n_enc)]
    pos += 2 * n_enc
    cb_ref, cbg_ref, cbsq_ref = refs[pos:pos + 3]
    pos += 3
    dec = [(refs[pos + 2 * i], refs[pos + 2 * i + 1]) for i in range(n_dec)]
    pos += 2 * n_dec
    out_ref, slab_ref = refs[pos:pos + 2]

    L, D = n_levels, e_dim

    # ---- encoder MLP: Linear(+ReLU) ... Linear ----
    h = x_ref[...].astype(jnp.float32)
    for i, (w_ref, b_ref) in enumerate(enc):
        w = w_ref[...]
        h = jnp.dot(h.astype(w.dtype), w, preferred_element_type=jnp.float32)
        h = h + b_ref[...].astype(jnp.float32)
        if i < n_enc - 1:
            h = jnp.maximum(h, 0.0)

    # ---- residual vector quantizer ----
    cb_all = cb_ref[...]              # (L, K, D)   distance-matmul operand
    cbg_all = cbg_ref[...]            # (L, K, D+1) f32 [codeword | index]
    cbsq_all = cbsq_ref[...]          # (L, K)      f32 0.5*||c||^2 (hoisted)

    # Zero the whole lane-dense output slab once (padding lanes deterministic).
    slab_ref[...] = jnp.zeros(slab_ref.shape, slab_ref.dtype)

    residual = h                      # (TB, D) f32
    x_q = jnp.zeros_like(h)
    sq_err = jnp.zeros_like(h)        # elementwise (x_res - r)^2 over levels

    for l in range(L):                # static unroll over levels (L is small)
        cb = cb_all[l]                # (K, D)
        # argmin_k ||r - c_k||^2 == argmin_k (0.5*||c_k||^2 - r.c_k):
        # the per-row ||r||^2 term and the factor 2 are argmin-invariant.
        dots = jax.lax.dot_general(
            residual.astype(cb.dtype), cb, (((1,), (1,)), ((), ())),
            preferred_element_type=jnp.float32)          # (TB, K)
        d = cbsq_all[l:l + 1, :] - dots                  # (TB, K)

        # Single XLU lane-reduction per level.  The equality mask is an exact
        # one-hot barring exact f32 distance ties (measure-zero for continuous
        # data).  TODO(synk): exact first-minimum tie-break (torch.argmin)
        # would cost a second reduction.
        d_min = jnp.min(d, axis=1, keepdims=True)        # (TB, 1)
        onehot = (d == d_min).astype(cbg_all.dtype)      # (TB, K)

        # One MXU matmul gathers the codeword AND its index.
        g = jnp.dot(onehot, cbg_all[l], preferred_element_type=jnp.float32)
        x_res = g[:, :D]                                 # (TB, D)
        slab_ref[:, D + l:D + l + 1] = g[:, D:D + 1]     # level index (as f32)

        diff = x_res - residual
        sq_err = sq_err + diff * diff
        x_q = x_q + x_res            # straight-through output == codeword sum
        residual = residual - x_res

    slab_ref[:, 0:D] = x_q
    # Per-row raw SSE partial; the wrapper reduces over rows and applies
    # (1+beta)/(L*B*e_dim) once => batch axis stays fully parallel.
    slab_ref[:, D + L:D + L + 1] = jnp.sum(sq_err, axis=1, keepdims=True)

    # ---- decoder MLP: Linear(+ReLU) ... Linear (last layer lane-padded) ----
    y = x_q
    for i, (w_ref, b_ref) in enumerate(dec):
        w = w_ref[...]
        y = jnp.dot(y.astype(w.dtype), w, preferred_element_type=jnp.float32)
        y = y + b_ref[...].astype(jnp.float32)
        if i < n_dec - 1:
            y = jnp.maximum(y, 0.0)
    out_ref[...] = y.astype(out_ref.dtype)


# ------------------------------- wrapper -------------------------------------
def rqvae_forward(x, enc_params, codebooks, dec_params, beta, *,
                  batch_tile=None, use_bf16=False):
    """Fused RQ-VAE forward. Returns (out, rq_loss, indices, x_q)."""
    B, in_dim = x.shape
    L, K, e_dim = codebooks.shape
    n_enc, n_dec = len(enc_params), len(dec_params)
    out_dim = dec_params[-1][0].shape[1]

    out_pad = _round_up(max(out_dim, _LANE), _LANE)
    slab_pad = _round_up(max(e_dim + L + 1, _LANE), _LANE)

    # MXU operand dtype: bf16 halves resident-weight VMEM and HBM traffic but
    # loosens parity with an f32 reference; keep f32 by default.
    wdt = jnp.bfloat16 if use_bf16 else jnp.float32

    # --- grid-invariant precompute, hoisted out of the kernel entirely ---
    cb_f32 = codebooks.astype(jnp.float32)
    cb_mxu = cb_f32.astype(wdt)                                  # distance operand
    cb_half_sq = 0.5 * jnp.sum(cb_f32 * cb_f32, axis=-1)         # (L, K)
    idx_col = jnp.broadcast_to(
        jnp.arange(K, dtype=jnp.float32)[None, :, None], (L, K, 1))
    cb_gather = jnp.concatenate([cb_f32, idx_col], axis=-1)      # (L, K, D+1)

    def _prep_mlp(params, pad_last_to=None):
        prepped = []
        for i, (w, b) in enumerate(params):
            w = w.astype(wdt)
            b = b.reshape(1, -1).astype(jnp.float32)
            if pad_last_to is not None and i == len(params) - 1:
                pad = pad_last_to - w.shape[1]
                if pad:
                    w = jnp.pad(w, ((0, 0), (0, pad)))
                    b = jnp.pad(b, ((0, 0), (0, pad)))
            prepped.append((w, b))
        return prepped

    enc_proc = _prep_mlp(enc_params)
    dec_proc = _prep_mlp(dec_params, pad_last_to=out_pad)

    # --- batch tiling: constants stay VMEM-resident, rows streamed ---
    tb = batch_tile if batch_tile is not None else min(B, 1024)
    if B % tb != 0 or (tb != B and tb % 8 != 0):
        tb = B  # TODO(synk): pad ragged batches (mask SSE / indices) instead
    grid = (B // tb,)

    consts = ([a for wb in enc_proc for a in wb]
              + [cb_mxu, cb_gather, cb_half_sq]
              + [a for wb in dec_proc for a in wb])
    const_bytes = sum(int(a.size) * a.dtype.itemsize for a in consts)
    act_w = max([in_dim, K, out_pad, slab_pad, e_dim + 1]
                + [w.shape[1] for (w, _) in enc_proc + dec_proc])
    stream_bytes = tb * (in_dim + out_pad + slab_pad + 4 * act_w) * 4
    # Explicit scoped-VMEM budget; clamped so it also fits v7x's 64 MiB VMEM.
    vmem_limit = int(min(max(2 * (const_bytes + stream_bytes) + (4 << 20),
                             32 << 20), 48 << 20))
    # TODO(synk): if resident weights alone exceed this budget (large models on
    # v5e/v7x), split the fusion (encoder+RQ / decoder) instead of spilling.

    def _run(single_buffer_constants):
        cmode = ({"pipeline_mode": pl.Buffered(1)}
                 if single_buffer_constants else {})
        act_map = lambda i: (i, 0)
        const2 = lambda i: (0, 0)
        const3 = lambda i: (0, 0, 0)

        inputs = [x]
        in_specs = [pl.BlockSpec((tb, in_dim), act_map)]
        for w, b in enc_proc:
            inputs += [w, b]
            in_specs += [pl.BlockSpec(w.shape, const2, **cmode),
                         pl.BlockSpec(b.shape, const2, **cmode)]
        inputs += [cb_mxu, cb_gather, cb_half_sq]
        in_specs += [pl.BlockSpec(cb_mxu.shape, const3, **cmode),
                     pl.BlockSpec(cb_gather.shape, const3, **cmode),
                     pl.BlockSpec(cb_half_sq.shape, const2, **cmode)]
        for w, b in dec_proc:
            inputs += [w, b]
            in_specs += [pl.BlockSpec(w.shape, const2, **cmode),
                         pl.BlockSpec(b.shape, const2, **cmode)]

        out_shape = (jax.ShapeDtypeStruct((B, out_pad), jnp.float32),
                     jax.ShapeDtypeStruct((B, slab_pad), jnp.float32))
        out_specs = (pl.BlockSpec((tb, out_pad), act_map),
                     pl.BlockSpec((tb, slab_pad), act_map))

        kernel = functools.partial(_rqvae_kernel, n_enc=n_enc, n_dec=n_dec,
                                   n_levels=L, e_dim=e_dim)
        return pl.pallas_call(
            kernel,
            grid=grid,
            out_shape=out_shape,
            in_specs=in_specs,
            out_specs=out_specs,
            compiler_params=pltpu.CompilerParams(
                dimension_semantics=("parallel",),  # no revisited output blocks
                vmem_limit_bytes=vmem_limit),
        )(*inputs)

    try:
        out_p, slab = _run(single_buffer_constants=True)
    except Exception:
        # pl.Buffered(1) not accepted by this jax build -> default buffering.
        out_p, slab = _run(single_buffer_constants=False)

    out = out_p[:, :out_dim]
    x_q = slab[:, :e_dim]
    indices = slab[:, e_dim:e_dim + L].astype(jnp.int32)
    loss_scale = (1.0 + beta) / (L * B * e_dim)
    rq_loss = jnp.sum(slab[:, e_dim + L]) * loss_scale
    return out, rq_loss, indices, x_q


# --------------------------- pure-JAX reference ------------------------------
def rqvae_reference(x, enc_params, codebooks, dec_params, beta):
    h = x
    for i, (w, b) in enumerate(enc_params):
        h = h @ w + b
        if i < len(enc_params) - 1:
            h = jnp.maximum(h, 0.0)
    residual = h
    x_q = jnp.zeros_like(h)
    losses, idxs = [], []
    for l in range(codebooks.shape[0]):
        cb = codebooks[l]
        d = (jnp.sum(residual * residual, axis=1, keepdims=True)
             - 2.0 * residual @ cb.T
             + jnp.sum(cb * cb, axis=1)[None, :])
        idx = jnp.argmin(d, axis=1)
        x_res = cb[idx]
        losses.append((1.0 + beta) * jnp.mean((x_res - residual) ** 2))
        idxs.append(idx)
        x_q = x_q + x_res
        residual = residual - x_res
    rq_loss = jnp.mean(jnp.stack(losses))
    indices = jnp.stack(idxs, axis=1).astype(jnp.int32)
    y = x_q
    for i, (w, b) in enumerate(dec_params):
        y = y @ w + b
        if i < len(dec_params) - 1:
            y = jnp.maximum(y, 0.0)
    return y, rq_loss, indices, x_q


# ---------------------------- parameter building -----------------------------
def init_linear(key, d_in, d_out):
    kw, kb = jax.random.split(key)
    bound = 1.0 / (d_in ** 0.5)
    w = jax.random.uniform(kw, (d_in, d_out), jnp.float32, -bound, bound)
    b = jax.random.uniform(kb, (1, d_out), jnp.float32, -bound, bound)
    return w, b


def init_mlp(key, dims):
    params = []
    for d_in, d_out in zip(dims[:-1], dims[1:]):
        key, sub = jax.random.split(key)
        params.append(init_linear(sub, d_in, d_out))
    return params


if __name__ == "__main__":
    # Small shapes consistent with the module's forward:
    # RQVAE(in_dim=32, layers=[16], e_dim=8, num_emb_list=[16, 16, 16], beta=1e-3)
    batch = 8
    in_dim = 32
    layers = [16]
    e_dim = 8
    num_emb_list = [16, 16, 16]
    beta = 0.001

    key = jax.random.PRNGKey(0)
    k_x, k_enc, k_dec, k_cb = jax.random.split(key, 4)

    encode_dims = [in_dim] + layers + [e_dim]
    decode_dims = encode_dims[::-1]

    enc_params = init_mlp(k_enc, encode_dims)
    dec_params = init_mlp(k_dec, decode_dims)
    # all levels share codebook size here -> pack into one (L, K, e_dim) array
    codebooks = jax.random.normal(
        k_cb, (len(num_emb_list), num_emb_list[0], e_dim), jnp.float32)

    x = jax.random.normal(k_x, (batch, in_dim), jnp.float32)

    out, rq_loss, indices, x_q = rqvae_forward(
        x, enc_params, codebooks, dec_params, beta)
    jax.block_until_ready((out, rq_loss, indices, x_q))

    assert out.shape == (batch, in_dim)
    assert x_q.shape == (batch, e_dim)
    assert indices.shape == (batch, len(num_emb_list))
    assert rq_loss.shape == ()

    # correctness check vs. pure-JAX reference
    ref_out, ref_loss, ref_idx, ref_xq = rqvae_reference(
        x, enc_params, codebooks, dec_params, beta)
    assert jnp.array_equal(indices, ref_idx), "codeword indices mismatch"
    assert jnp.allclose(x_q, ref_xq, rtol=1e-4, atol=1e-4)
    assert jnp.allclose(out, ref_out, rtol=1e-4, atol=1e-4)
    assert jnp.allclose(rq_loss, ref_loss, rtol=1e-4, atol=1e-5)

    print("KERNEL_OK")
</pallas_src>

<mosaic_0001>
module attributes {stable_mosaic.version = 11 : i64} {
  func.func @_rqvae_kernel(%arg0: i32, %arg1: memref<8x32xf32, #tpu.memory_space<vmem>>, %arg2: memref<32x16xf32, #tpu.memory_space<vmem>>, %arg3: memref<1x16xf32, #tpu.memory_space<vmem>>, %arg4: memref<16x8xf32, #tpu.memory_space<vmem>>, %arg5: memref<1x8xf32, #tpu.memory_space<vmem>>, %arg6: memref<3x16x8xf32, #tpu.memory_space<vmem>>, %arg7: memref<3x16x9xf32, #tpu.memory_space<vmem>>, %arg8: memref<3x16xf32, #tpu.memory_space<vmem>>, %arg9: memref<8x16xf32, #tpu.memory_space<vmem>>, %arg10: memref<1x16xf32, #tpu.memory_space<vmem>>, %arg11: memref<16x128xf32, #tpu.memory_space<vmem>>, %arg12: memref<1x128xf32, #tpu.memory_space<vmem>>, %arg13: memref<8x128xf32, #tpu.memory_space<vmem>>, %arg14: memref<8x128xf32, #tpu.memory_space<vmem>>) attributes {dimension_semantics = [#tpu.dimension_semantics<parallel>], iteration_bounds = array<i64: 1>, scalar_prefetch = 0 : i64, scratch_operands = 0 : i64, tpu.core_type = #tpu.core_type<tc>, window_params = [{transform_indices = @transform_0, window_bounds = array<i64: 8, 32>}, {pipeline_mode = #tpu.pipeline_mode<synchronous>, transform_indices = @transform_1, window_bounds = array<i64: 32, 16>}, {pipeline_mode = #tpu.pipeline_mode<synchronous>, transform_indices = @transform_2, window_bounds = array<i64: 1, 16>}, {pipeline_mode = #tpu.pipeline_mode<synchronous>, transform_indices = @transform_3, window_bounds = array<i64: 16, 8>}, {pipeline_mode = #tpu.pipeline_mode<synchronous>, transform_indices = @transform_4, window_bounds = array<i64: 1, 8>}, {pipeline_mode = #tpu.pipeline_mode<synchronous>, transform_indices = @transform_5, window_bounds = array<i64: 3, 16, 8>}, {pipeline_mode = #tpu.pipeline_mode<synchronous>, transform_indices = @transform_6, window_bounds = array<i64: 3, 16, 9>}, {pipeline_mode = #tpu.pipeline_mode<synchronous>, transform_indices = @transform_7, window_bounds = array<i64: 3, 16>}, {pipeline_mode = #tpu.pipeline_mode<synchronous>, transform_indices = @transform_8, window_bounds = array<i64: 8, 16>}, {pipeline_mode = #tpu.pipeline_mode<synchronous>, transform_indices = @transform_9, window_bounds = array<i64: 1, 16>}, {pipeline_mode = #tpu.pipeline_mode<synchronous>, transform_indices = @transform_10, window_bounds = array<i64: 16, 128>}, {pipeline_mode = #tpu.pipeline_mode<synchronous>, transform_indices = @transform_11, window_bounds = array<i64: 1, 128>}, {transform_indices = @transform_12, window_bounds = array<i64: 8, 128>}, {transform_indices = @transform_13, window_bounds = array<i64: 8, 128>}]} {
    %c0 = arith.constant 0 : index
    %c0_0 = arith.constant 0 : index
    %0 = vector.load %arg1[%c0, %c0_0] : memref<8x32xf32, #tpu.memory_space<vmem>>, vector<8x32xf32>
    %c0_1 = arith.constant 0 : index
    %c0_2 = arith.constant 0 : index
    %1 = vector.load %arg2[%c0_1, %c0_2] : memref<32x16xf32, #tpu.memory_space<vmem>>, vector<32x16xf32>
    %cst = arith.constant dense<0.000000e+00> : vector<8x16xf32>
    %2 = tpu.matmul %0, %1, %cst {dimension_numbers = #tpu.dot_dimension_numbers<[1], [0], [0], [1], [0, 0, 1, 1], [], []>} : vector<8x32xf32>, vector<32x16xf32>, vector<8x16xf32> -> vector<8x16xf32>
    %c0_3 = arith.constant 0 : index
    %c0_4 = arith.constant 0 : index
    %3 = vector.load %arg3[%c0_3, %c0_4] : memref<1x16xf32, #tpu.memory_space<vmem>>, vector<1x16xf32>
    %4 = vector.broadcast %3 : vector<1x16xf32> to vector<8x16xf32>
    %5 = arith.addf %2, %4 : vector<8x16xf32>
    %cst_5 = arith.constant 0.000000e+00 : f32
    %6 = vector.broadcast %cst_5 : f32 to vector<8x16xf32>
    %7 = arith.maximumf %5, %6 : vector<8x16xf32>
    %c0_6 = arith.constant 0 : index
    %c0_7 = arith.constant 0 : index
    %8 = vector.load %arg4[%c0_6, %c0_7] : memref<16x8xf32, #tpu.memory_space<vmem>>, vector<16x8xf32>
    %cst_8 = arith.constant dense<0.000000e+00> : vector<8x8xf32>
    %9 = tpu.matmul %7, %8, %cst_8 {dimension_numbers = #tpu.dot_dimension_numbers<[1], [0], [0], [1], [0, 0, 1, 1], [], []>} : vector<8x16xf32>, vector<16x8xf32>, vector<8x8xf32> -> vector<8x8xf32>
    %c0_9 = arith.constant 0 : index
    %c0_10 = arith.constant 0 : index
    %10 = vector.load %arg5[%c0_9, %c0_10] : memref<1x8xf32, #tpu.memory_space<vmem>>, vector<1x8xf32>
    %11 = vector.broadcast %10 : vector<1x8xf32> to vector<8x8xf32>
    %12 = arith.addf %9, %11 : vector<8x8xf32>
    %c0_11 = arith.constant 0 : index
    %c0_12 = arith.constant 0 : index
    %c0_13 = arith.constant 0 : index
    %13 = vector.load %arg6[%c0_11, %c0_12, %c0_13] : memref<3x16x8xf32, #tpu.memory_space<vmem>>, vector<3x16x8xf32>
    %c0_14 = arith.constant 0 : index
    %c0_15 = arith.constant 0 : index
    %c0_16 = arith.constant 0 : index
    %14 = vector.load %arg7[%c0_14, %c0_15, %c0_16] : memref<3x16x9xf32, #tpu.memory_space<vmem>>, vector<3x16x9xf32>
    %c0_17 = arith.constant 0 : index
    %c0_18 = arith.constant 0 : index
    %15 = vector.load %arg8[%c0_17, %c0_18] : memref<3x16xf32, #tpu.memory_space<vmem>>, vector<3x16xf32>
    %cst_19 = arith.constant 0.000000e+00 : f32
    %16 = vector.broadcast %cst_19 : f32 to vector<8x128xf32>
    %c0_20 = arith.constant 0 : index
    %c0_21 = arith.constant 0 : index
    %17 = vector.load %arg14[%c0_20, %c0_21] : memref<8x128xf32, #tpu.memory_space<vmem>>, vector<8x128xf32>
    tpu.vector_store %arg14[%c0_20, %c0_21], %16 {strides = array<i32>} : memref<8x128xf32, #tpu.memory_space<vmem>>, vector<8x128xf32>,
    %cst_22 = arith.constant 0.000000e+00 : f32
    %18 = vector.broadcast %cst_22 : f32 to vector<8x8xf32>
    %cst_23 = arith.constant 0.000000e+00 : f32
    %19 = vector.broadcast %cst_23 : f32 to vector<8x8xf32>
    %20 = vector.extract_strided_slice %13 {offsets = [0, 0, 0], sizes = [1, 16, 8], strides = [1, 1, 1]} : vector<3x16x8xf32> to vector<1x16x8xf32>
    %21 = vector.shape_cast %20 : vector<1x16x8xf32> to vector<16x8xf32>
    %cst_24 = arith.constant dense<0.000000e+00> : vector<8x16xf32>
    %22 = tpu.matmul %12, %21, %cst_24 {dimension_numbers = #tpu.dot_dimension_numbers<[1], [1], [0], [0], [0, 0, 1, 0], [], []>} : vector<8x8xf32>, vector<16x8xf32>, vector<8x16xf32> -> vector<8x16xf32>
    %23 = vector.extract_strided_slice %15 {offsets = [0, 0], sizes = [1, 16], strides = [1, 1]} : vector<3x16xf32> to vector<1x16xf32>
    %24 = vector.broadcast %23 : vector<1x16xf32> to vector<8x16xf32>
    %25 = arith.subf %24, %22 : vector<8x16xf32>
    %cst_25 = arith.constant dense<0x7F800000> : vector<8xf32>
    %26 = vector.multi_reduction <minimumf>, %25, %cst_25 [1] : vector<8x16xf32> to vector<8xf32>
    %27 = vector.shape_cast %26 : vector<8xf32> to vector<8x1xf32>
    %28 = vector.broadcast %27 : vector<8x1xf32> to vector<8x16xf32>
    %29 = arith.cmpf oeq, %25, %28 : vector<8x16xf32>
    %30 = arith.extui %29 : vector<8x16xi1> to vector<8x16xi32>
    %31 = arith.sitofp %30 : vector<8x16xi32> to vector<8x16xf32>
    %32 = vector.extract_strided_slice %14 {offsets = [0, 0, 0], sizes = [1, 16, 9], strides = [1, 1, 1]} : vector<3x16x9xf32> to vector<1x16x9xf32>
    %33 = vector.shape_cast %32 : vector<1x16x9xf32> to vector<16x9xf32>
    %cst_26 = arith.constant dense<0.000000e+00> : vector<8x9xf32>
    %34 = tpu.matmul %31, %33, %cst_26 {dimension_numbers = #tpu.dot_dimension_numbers<[1], [0], [0], [1], [0, 0, 1, 1], [], []>} : vector<8x16xf32>, vector<16x9xf32>, vector<8x9xf32> -> vector<8x9xf32>
    %35 = vector.extract_strided_slice %34 {offsets = [0, 0], sizes = [8, 8], strides = [1, 1]} : vector<8x9xf32> to vector<8x8xf32>
    %36 = vector.extract_strided_slice %34 {offsets = [0, 8], sizes = [8, 1], strides = [1, 1]} : vector<8x9xf32> to vector<8x1xf32>
    %c0_27 = arith.constant 0 : index
    %c8 = arith.constant 8 : index
    %37 = vector.load %arg14[%c0_27, %c8] : memref<8x128xf32, #tpu.memory_space<vmem>>, vector<8x1xf32>
    tpu.vector_store %arg14[%c0_27, %c8], %36 {strides = array<i32>} : memref<8x128xf32, #tpu.memory_space<vmem>>, vector<8x1xf32>,
    %38 = arith.subf %35, %12 : vector<8x8xf32>
    %39 = arith.mulf %38, %38 : vector<8x8xf32>
    %40 = arith.addf %19, %39 : vector<8x8xf32>
    %41 = arith.addf %18, %35 : vector<8x8xf32>
    %42 = arith.subf %12, %35 : vector<8x8xf32>
    %43 = vector.extract_strided_slice %13 {offsets = [1, 0, 0], sizes = [1, 16, 8], strides = [1, 1, 1]} : vector<3x16x8xf32> to vector<1x16x8xf32>
    %44 = vector.shape_cast %43 : vector<1x16x8xf32> to vector<16x8xf32>
    %cst_28 = arith.constant dense<0.000000e+00> : vector<8x16xf32>
    %45 = tpu.matmul %42, %44, %cst_28 {dimension_numbers = #tpu.dot_dimension_numbers<[1], [1], [0], [0], [0, 0, 1, 0], [], []>} : vector<8x8xf32>, vector<16x8xf32>, vector<8x16xf32> -> vector<8x16xf32>
    %46 = vector.extract_strided_slice %15 {offsets = [1, 0], sizes = [1, 16], strides = [1, 1]} : vector<3x16xf32> to vector<1x16xf32>
    %47 = vector.broadcast %46 : vector<1x16xf32> to vector<8x16xf32>
    %48 = arith.subf %47, %45 : vector<8x16xf32>
    %cst_29 = arith.constant dense<0x7F800000> : vector<8xf32>
    %49 = vector.multi_reduction <minimumf>, %48, %cst_29 [1] : vector<8x16xf32> to vector<8xf32>
    %50 = vector.shape_cast %49 : vector<8xf32> to vector<8x1xf32>
    %51 = vector.broadcast %50 : vector<8x1xf32> to vector<8x16xf32>
    %52 = arith.cmpf oeq, %48, %51 : vector<8x16xf32>
    %53 = arith.extui %52 : vector<8x16xi1> to vector<8x16xi32>
    %54 = arith.sitofp %53 : vector<8x16xi32> to vector<8x16xf32>
    %55 = vector.extract_strided_slice %14 {offsets = [1, 0, 0], sizes = [1, 16, 9], strides = [1, 1, 1]} : vector<3x16x9xf32> to vector<1x16x9xf32>
    %56 = vector.shape_cast %55 : vector<1x16x9xf32> to vector<16x9xf32>
    %cst_30 = arith.constant dense<0.000000e+00> : vector<8x9xf32>
    %57 = tpu.matmul %54, %56, %cst_30 {dimension_numbers = #tpu.dot_dimension_numbers<[1], [0], [0], [1], [0, 0, 1, 1], [], []>} : vector<8x16xf32>, vector<16x9xf32>, vector<8x9xf32> -> vector<8x9xf32>
    %58 = vector.extract_strided_slice %57 {offsets = [0, 0], sizes = [8, 8], strides = [1, 1]} : vector<8x9xf32> to vector<8x8xf32>
    %59 = vector.extract_strided_slice %57 {offsets = [0, 8], sizes = [8, 1], strides = [1, 1]} : vector<8x9xf32> to vector<8x1xf32>
    %c0_31 = arith.constant 0 : index
    %c9 = arith.constant 9 : index
    %60 = vector.load %arg14[%c0_31, %c9] : memref<8x128xf32, #tpu.memory_space<vmem>>, vector<8x1xf32>
    tpu.vector_store %arg14[%c0_31, %c9], %59 {strides = array<i32>} : memref<8x128xf32, #tpu.memory_space<vmem>>, vector<8x1xf32>,
    %61 = arith.subf %58, %42 : vector<8x8xf32>
    %62 = arith.mulf %61, %61 : vector<8x8xf32>
    %63 = arith.addf %40, %62 : vector<8x8xf32>
    %64 = arith.addf %41, %58 : vector<8x8xf32>
    %65 = arith.subf %42, %58 : vector<8x8xf32>
    %66 = vector.extract_strided_slice %13 {offsets = [2, 0, 0], sizes = [1, 16, 8], strides = [1, 1, 1]} : vector<3x16x8xf32> to vector<1x16x8xf32>
    %67 = vector.shape_cast %66 : vector<1x16x8xf32> to vector<16x8xf32>
    %cst_32 = arith.constant dense<0.000000e+00> : vector<8x16xf32>
    %68 = tpu.matmul %65, %67, %cst_32 {dimension_numbers = #tpu.dot_dimension_numbers<[1], [1], [0], [0], [0, 0, 1, 0], [], []>} : vector<8x8xf32>, vector<16x8xf32>, vector<8x16xf32> -> vector<8x16xf32>
    %69 = vector.extract_strided_slice %15 {offsets = [2, 0], sizes = [1, 16], strides = [1, 1]} : vector<3x16xf32> to vector<1x16xf32>
    %70 = vector.broadcast %69 : vector<1x16xf32> to vector<8x16xf32>
    %71 = arith.subf %70, %68 : vector<8x16xf32>
    %cst_33 = arith.constant dense<0x7F800000> : vector<8xf32>
    %72 = vector.multi_reduction <minimumf>, %71, %cst_33 [1] : vector<8x16xf32> to vector<8xf32>
    %73 = vector.shape_cast %72 : vector<8xf32> to vector<8x1xf32>
    %74 = vector.broadcast %73 : vector<8x1xf32> to vector<8x16xf32>
    %75 = arith.cmpf oeq, %71, %74 : vector<8x16xf32>
    %76 = arith.extui %75 : vector<8x16xi1> to vector<8x16xi32>
    %77 = arith.sitofp %76 : vector<8x16xi32> to vector<8x16xf32>
    %78 = vector.extract_strided_slice %14 {offsets = [2, 0, 0], sizes = [1, 16, 9], strides = [1, 1, 1]} : vector<3x16x9xf32> to vector<1x16x9xf32>
    %79 = vector.shape_cast %78 : vector<1x16x9xf32> to vector<16x9xf32>
    %cst_34 = arith.constant dense<0.000000e+00> : vector<8x9xf32>
    %80 = tpu.matmul %77, %79, %cst_34 {dimension_numbers = #tpu.dot_dimension_numbers<[1], [0], [0], [1], [0, 0, 1, 1], [], []>} : vector<8x16xf32>, vector<16x9xf32>, vector<8x9xf32> -> vector<8x9xf32>
    %81 = vector.extract_strided_slice %80 {offsets = [0, 0], sizes = [8, 8], strides = [1, 1]} : vector<8x9xf32> to vector<8x8xf32>
    %82 = vector.extract_strided_slice %80 {offsets = [0, 8], sizes = [8, 1], strides = [1, 1]} : vector<8x9xf32> to vector<8x1xf32>
    %c0_35 = arith.constant 0 : index
    %c10 = arith.constant 10 : index
    %83 = vector.load %arg14[%c0_35, %c10] : memref<8x128xf32, #tpu.memory_space<vmem>>, vector<8x1xf32>
    tpu.vector_store %arg14[%c0_35, %c10], %82 {strides = array<i32>} : memref<8x128xf32, #tpu.memory_space<vmem>>, vector<8x1xf32>,
    %84 = arith.subf %81, %65 : vector<8x8xf32>
    %85 = arith.mulf %84, %84 : vector<8x8xf32>
    %86 = arith.addf %63, %85 : vector<8x8xf32>
    %87 = arith.addf %64, %81 : vector<8x8xf32>
    %c0_36 = arith.constant 0 : index
    %c0_37 = arith.constant 0 : index
    %88 = vector.load %arg14[%c0_36, %c0_37] : memref<8x128xf32, #tpu.memory_space<vmem>>, vector<8x8xf32>
    tpu.vector_store %arg14[%c0_36, %c0_37], %87 {strides = array<i32>} : memref<8x128xf32, #tpu.memory_space<vmem>>, vector<8x8xf32>,
    %cst_38 = arith.constant dense<0.000000e+00> : vector<8xf32>
    %89 = vector.multi_reduction <add>, %86, %cst_38 [1] : vector<8x8xf32> to vector<8xf32>
    %90 = vector.shape_cast %89 : vector<8xf32> to vector<8x1xf32>
    %c0_39 = arith.constant 0 : index
    %c11 = arith.constant 11 : index
    %91 = vector.load %arg14[%c0_39, %c11] : memref<8x128xf32, #tpu.memory_space<vmem>>, vector<8x1xf32>
    tpu.vector_store %arg14[%c0_39, %c11], %90 {strides = array<i32>} : memref<8x128xf32, #tpu.memory_space<vmem>>, vector<8x1xf32>,
    %c0_40 = arith.constant 0 : index
    %c0_41 = arith.constant 0 : index
    %92 = vector.load %arg9[%c0_40, %c0_41] : memref<8x16xf32, #tpu.memory_space<vmem>>, vector<8x16xf32>
    %cst_42 = arith.constant dense<0.000000e+00> : vector<8x16xf32>
    %93 = tpu.matmul %87, %92, %cst_42 {dimension_numbers = #tpu.dot_dimension_numbers<[1], [0], [0], [1], [0, 0, 1, 1], [], []>} : vector<8x8xf32>, vector<8x16xf32>, vector<8x16xf32> -> vector<8x16xf32>
    %c0_43 = arith.constant 0 : index
    %c0_44 = arith.constant 0 : index
    %94 = vector.load %arg10[%c0_43, %c0_44] : memref<1x16xf32, #tpu.memory_space<vmem>>, vector<1x16xf32>
    %95 = vector.broadcast %94 : vector<1x16xf32> to vector<8x16xf32>
    %96 = arith.addf %93, %95 : vector<8x16xf32>
    %cst_45 = arith.constant 0.000000e+00 : f32
    %97 = vector.broadcast %cst_45 : f32 to vector<8x16xf32>
    %98 = arith.maximumf %96, %97 : vector<8x16xf32>
    %c0_46 = arith.constant 0 : index
    %c0_47 = arith.constant 0 : index
    %99 = vector.load %arg11[%c0_46, %c0_47] : memref<16x128xf32, #tpu.memory_space<vmem>>, vector<16x128xf32>
    %cst_48 = arith.constant dense<0.000000e+00> : vector<8x128xf32>
    %100 = tpu.matmul %98, %99, %cst_48 {dimension_numbers = #tpu.dot_dimension_numbers<[1], [0], [0], [1], [0, 0, 1, 1], [], []>} : vector<8x16xf32>, vector<16x128xf32>, vector<8x128xf32> -> vector<8x128xf32>
    %c0_49 = arith.constant 0 : index
    %c0_50 = arith.constant 0 : index
    %101 = vector.load %arg12[%c0_49, %c0_50] : memref<1x128xf32, #tpu.memory_space<vmem>>, vector<1x128xf32>
    %102 = vector.broadcast %101 : vector<1x128xf32> to vector<8x128xf32>
    %103 = arith.addf %100, %102 : vector<8x128xf32>
    %c0_51 = arith.constant 0 : index
    %c0_52 = arith.constant 0 : index
    %104 = vector.load %arg13[%c0_51, %c0_52] : memref<8x128xf32, #tpu.memory_space<vmem>>, vector<8x128xf32>
    tpu.vector_store %arg13[%c0_51, %c0_52], %103 {strides = array<i32>} : memref<8x128xf32, #tpu.memory_space<vmem>>, vector<8x128xf32>,
    return
  }
  func.func @transform_0(%arg0: i32) -> (i32, i32) {
    %c0_i32 = arith.constant 0 : i32
    %c0_i32_0 = arith.constant 0 : i32
    return %arg0, %c0_i32 : i32, i32
  }
  func.func @transform_1(%arg0: i32) -> (i32, i32) {
    %c0_i32 = arith.constant 0 : i32
    %c0_i32_0 = arith.constant 0 : i32
    %c0_i32_1 = arith.constant 0 : i32
    return %c0_i32, %c0_i32_0 : i32, i32
  }
  func.func @transform_2(%arg0: i32) -> (i32, i32) {
    %c0_i32 = arith.constant 0 : i32
    %c0_i32_0 = arith.constant 0 : i32
    %c0_i32_1 = arith.constant 0 : i32
    return %c0_i32, %c0_i32_0 : i32, i32
  }
  func.func @transform_3(%arg0: i32) -> (i32, i32) {
    %c0_i32 = arith.constant 0 : i32
    %c0_i32_0 = arith.constant 0 : i32
    %c0_i32_1 = arith.constant 0 : i32
    return %c0_i32, %c0_i32_0 : i32, i32
  }
  func.func @transform_4(%arg0: i32) -> (i32, i32) {
    %c0_i32 = arith.constant 0 : i32
    %c0_i32_0 = arith.constant 0 : i32
    %c0_i32_1 = arith.constant 0 : i32
    return %c0_i32, %c0_i32_0 : i32, i32
  }
  func.func @transform_5(%arg0: i32) -> (i32, i32, i32) {
    %c0_i32 = arith.constant 0 : i32
    %c0_i32_0 = arith.constant 0 : i32
    %c0_i32_1 = arith.constant 0 : i32
    %c0_i32_2 = arith.constant 0 : i32
    return %c0_i32, %c0_i32_0, %c0_i32_1 : i32, i32, i32
  }
  func.func @transform_6(%arg0: i32) -> (i32, i32, i32) {
    %c0_i32 = arith.constant 0 : i32
    %c0_i32_0 = arith.constant 0 : i32
    %c0_i32_1 = arith.constant 0 : i32
    %c0_i32_2 = arith.constant 0 : i32
    return %c0_i32, %c0_i32_0, %c0_i32_1 : i32, i32, i32
  }
  func.func @transform_7(%arg0: i32) -> (i32, i32) {
    %c0_i32 = arith.constant 0 : i32
    %c0_i32_0 = arith.constant 0 : i32
    %c0_i32_1 = arith.constant 0 : i32
    return %c0_i32, %c0_i32_0 : i32, i32
  }
  func.func @transform_8(%arg0: i32) -> (i32, i32) {
    %c0_i32 = arith.constant 0 : i32
    %c0_i32_0 = arith.constant 0 : i32
    %c0_i32_1 = arith.constant 0 : i32
    return %c0_i32, %c0_i32_0 : i32, i32
  }
  func.func @transform_9(%arg0: i32) -> (i32, i32) {
    %c0_i32 = arith.constant 0 : i32
    %c0_i32_0 = arith.constant 0 : i32
    %c0_i32_1 = arith.constant 0 : i32
    return %c0_i32, %c0_i32_0 : i32, i32
  }
  func.func @transform_10(%arg0: i32) -> (i32, i32) {
    %c0_i32 = arith.constant 0 : i32
    %c0_i32_0 = arith.constant 0 : i32
    %c0_i32_1 = arith.constant 0 : i32
    return %c0_i32, %c0_i32_0 : i32, i32
  }
  func.func @transform_11(%arg0: i32) -> (i32, i32) {
    %c0_i32 = arith.constant 0 : i32
    %c0_i32_0 = arith.constant 0 : i32
    %c0_i32_1 = arith.constant 0 : i32
    return %c0_i32, %c0_i32_0 : i32, i32
  }
  func.func @transform_12(%arg0: i32) -> (i32, i32) {
    %c0_i32 = arith.constant 0 : i32
    %c0_i32_0 = arith.constant 0 : i32
    return %arg0, %c0_i32 : i32, i32
  }
  func.func @transform_13(%arg0: i32) -> (i32, i32) {
    %c0_i32 = arith.constant 0 : i32
    %c0_i32_0 = arith.constant 0 : i32
    return %arg0, %c0_i32 : i32, i32
  }
}

module attributes {stable_mosaic.version = 11 : i64} {
  func.func @_rqvae_kernel(%arg0: i32, %arg1: memref<8x32xf32, #tpu.memory_space<vmem>>, %arg2: memref<32x16xf32, #tpu.memory_space<vmem>>, %arg3: memref<1x16xf32, #tpu.memory_space<vmem>>, %arg4: memref<16x8xf32, #tpu.memory_space<vmem>>, %arg5: memref<1x8xf32, #tpu.memory_space<vmem>>, %arg6: memref<3x16x8xf32, #tpu.memory_space<vmem>>, %arg7: memref<3x16x9xf32, #tpu.memory_space<vmem>>, %arg8: memref<3x16xf32, #tpu.memory_space<vmem>>, %arg9: memref<8x16xf32, #tpu.memory_space<vmem>>, %arg10: memref<1x16xf32, #tpu.memory_space<vmem>>, %arg11: memref<16x128xf32, #tpu.memory_space<vmem>>, %arg12: memref<1x128xf32, #tpu.memory_space<vmem>>, %arg13: memref<8x128xf32, #tpu.memory_space<vmem>>, %arg14: memref<8x128xf32, #tpu.memory_space<vmem>>) attributes {dimension_semantics = [#tpu.dimension_semantics<parallel>], iteration_bounds = array<i64: 1>, scalar_prefetch = 0 : i64, scratch_operands = 0 : i64, tpu.core_type = #tpu.core_type<tc>, window_params = [{transform_indices = @transform_0, window_bounds = array<i64: 8, 32>}, {pipeline_mode = #tpu.pipeline_mode<synchronous>, transform_indices = @transform_1, window_bounds = array<i64: 32, 16>}, {pipeline_mode = #tpu.pipeline_mode<synchronous>, transform_indices = @transform_2, window_bounds = array<i64: 1, 16>}, {pipeline_mode = #tpu.pipeline_mode<synchronous>, transform_indices = @transform_3, window_bounds = array<i64: 16, 8>}, {pipeline_mode = #tpu.pipeline_mode<synchronous>, transform_indices = @transform_4, window_bounds = array<i64: 1, 8>}, {pipeline_mode = #tpu.pipeline_mode<synchronous>, transform_indices = @transform_5, window_bounds = array<i64: 3, 16, 8>}, {pipeline_mode = #tpu.pipeline_mode<synchronous>, transform_indices = @transform_6, window_bounds = array<i64: 3, 16, 9>}, {pipeline_mode = #tpu.pipeline_mode<synchronous>, transform_indices = @transform_7, window_bounds = array<i64: 3, 16>}, {pipeline_mode = #tpu.pipeline_mode<synchronous>, transform_indices = @transform_8, window_bounds = array<i64: 8, 16>}, {pipeline_mode = #tpu.pipeline_mode<synchronous>, transform_indices = @transform_9, window_bounds = array<i64: 1, 16>}, {pipeline_mode = #tpu.pipeline_mode<synchronous>, transform_indices = @transform_10, window_bounds = array<i64: 16, 128>}, {pipeline_mode = #tpu.pipeline_mode<synchronous>, transform_indices = @transform_11, window_bounds = array<i64: 1, 128>}, {transform_indices = @transform_12, window_bounds = array<i64: 8, 128>}, {transform_indices = @transform_13, window_bounds = array<i64: 8, 128>}]} {
    %c0 = arith.constant 0 : index
    %c0_0 = arith.constant 0 : index
    %0 = vector.load %arg1[%c0, %c0_0] : memref<8x32xf32, #tpu.memory_space<vmem>>, vector<8x32xf32>
    %c0_1 = arith.constant 0 : index
    %c0_2 = arith.constant 0 : index
    %1 = vector.load %arg2[%c0_1, %c0_2] : memref<32x16xf32, #tpu.memory_space<vmem>>, vector<32x16xf32>
    %cst = arith.constant dense<0.000000e+00> : vector<8x16xf32>
    %2 = tpu.matmul %0, %1, %cst {dimension_numbers = #tpu.dot_dimension_numbers<[1], [0], [0], [1], [0, 0, 1, 1], [], []>} : vector<8x32xf32>, vector<32x16xf32>, vector<8x16xf32> -> vector<8x16xf32>
    %c0_3 = arith.constant 0 : index
    %c0_4 = arith.constant 0 : index
    %3 = vector.load %arg3[%c0_3, %c0_4] : memref<1x16xf32, #tpu.memory_space<vmem>>, vector<1x16xf32>
    %4 = vector.broadcast %3 : vector<1x16xf32> to vector<8x16xf32>
    %5 = arith.addf %2, %4 : vector<8x16xf32>
    %cst_5 = arith.constant 0.000000e+00 : f32
    %6 = vector.broadcast %cst_5 : f32 to vector<8x16xf32>
    %7 = arith.maximumf %5, %6 : vector<8x16xf32>
    %c0_6 = arith.constant 0 : index
    %c0_7 = arith.constant 0 : index
    %8 = vector.load %arg4[%c0_6, %c0_7] : memref<16x8xf32, #tpu.memory_space<vmem>>, vector<16x8xf32>
    %cst_8 = arith.constant dense<0.000000e+00> : vector<8x8xf32>
    %9 = tpu.matmul %7, %8, %cst_8 {dimension_numbers = #tpu.dot_dimension_numbers<[1], [0], [0], [1], [0, 0, 1, 1], [], []>} : vector<8x16xf32>, vector<16x8xf32>, vector<8x8xf32> -> vector<8x8xf32>
    %c0_9 = arith.constant 0 : index
    %c0_10 = arith.constant 0 : index
    %10 = vector.load %arg5[%c0_9, %c0_10] : memref<1x8xf32, #tpu.memory_space<vmem>>, vector<1x8xf32>
    %11 = vector.broadcast %10 : vector<1x8xf32> to vector<8x8xf32>
    %12 = arith.addf %9, %11 : vector<8x8xf32>
    %c0_11 = arith.constant 0 : index
    %c0_12 = arith.constant 0 : index
    %c0_13 = arith.constant 0 : index
    %13 = vector.load %arg6[%c0_11, %c0_12, %c0_13] : memref<3x16x8xf32, #tpu.memory_space<vmem>>, vector<3x16x8xf32>
    %c0_14 = arith.constant 0 : index
    %c0_15 = arith.constant 0 : index
    %c0_16 = arith.constant 0 : index
    %14 = vector.load %arg7[%c0_14, %c0_15, %c0_16] : memref<3x16x9xf32, #tpu.memory_space<vmem>>, vector<3x16x9xf32>
    %c0_17 = arith.constant 0 : index
    %c0_18 = arith.constant 0 : index
    %15 = vector.load %arg8[%c0_17, %c0_18] : memref<3x16xf32, #tpu.memory_space<vmem>>, vector<3x16xf32>
    %cst_19 = arith.constant 0.000000e+00 : f32
    %16 = vector.broadcast %cst_19 : f32 to vector<8x128xf32>
    %c0_20 = arith.constant 0 : index
    %c0_21 = arith.constant 0 : index
    %17 = vector.load %arg14[%c0_20, %c0_21] : memref<8x128xf32, #tpu.memory_space<vmem>>, vector<8x128xf32>
    tpu.vector_store %arg14[%c0_20, %c0_21], %16 {strides = array<i32>} : memref<8x128xf32, #tpu.memory_space<vmem>>, vector<8x128xf32>,
    %cst_22 = arith.constant 0.000000e+00 : f32
    %18 = vector.broadcast %cst_22 : f32 to vector<8x8xf32>
    %cst_23 = arith.constant 0.000000e+00 : f32
    %19 = vector.broadcast %cst_23 : f32 to vector<8x8xf32>
    %20 = vector.extract_strided_slice %13 {offsets = [0, 0, 0], sizes = [1, 16, 8], strides = [1, 1, 1]} : vector<3x16x8xf32> to vector<1x16x8xf32>
    %21 = vector.shape_cast %20 : vector<1x16x8xf32> to vector<16x8xf32>
    %cst_24 = arith.constant dense<0.000000e+00> : vector<8x16xf32>
    %22 = tpu.matmul %12, %21, %cst_24 {dimension_numbers = #tpu.dot_dimension_numbers<[1], [1], [0], [0], [0, 0, 1, 0], [], []>} : vector<8x8xf32>, vector<16x8xf32>, vector<8x16xf32> -> vector<8x16xf32>
    %23 = vector.extract_strided_slice %15 {offsets = [0, 0], sizes = [1, 16], strides = [1, 1]} : vector<3x16xf32> to vector<1x16xf32>
    %24 = vector.broadcast %23 : vector<1x16xf32> to vector<8x16xf32>
    %25 = arith.subf %24, %22 : vector<8x16xf32>
    %cst_25 = arith.constant dense<0x7F800000> : vector<8xf32>
    %26 = vector.multi_reduction <minimumf>, %25, %cst_25 [1] : vector<8x16xf32> to vector<8xf32>
    %27 = vector.shape_cast %26 : vector<8xf32> to vector<8x1xf32>
    %28 = vector.broadcast %27 : vector<8x1xf32> to vector<8x16xf32>
    %29 = arith.cmpf oeq, %25, %28 : vector<8x16xf32>
    %30 = arith.extui %29 : vector<8x16xi1> to vector<8x16xi32>
    %31 = arith.sitofp %30 : vector<8x16xi32> to vector<8x16xf32>
    %32 = vector.extract_strided_slice %14 {offsets = [0, 0, 0], sizes = [1, 16, 9], strides = [1, 1, 1]} : vector<3x16x9xf32> to vector<1x16x9xf32>
    %33 = vector.shape_cast %32 : vector<1x16x9xf32> to vector<16x9xf32>
    %cst_26 = arith.constant dense<0.000000e+00> : vector<8x9xf32>
    %34 = tpu.matmul %31, %33, %cst_26 {dimension_numbers = #tpu.dot_dimension_numbers<[1], [0], [0], [1], [0, 0, 1, 1], [], []>} : vector<8x16xf32>, vector<16x9xf32>, vector<8x9xf32> -> vector<8x9xf32>
    %35 = vector.extract_strided_slice %34 {offsets = [0, 0], sizes = [8, 8], strides = [1, 1]} : vector<8x9xf32> to vector<8x8xf32>
    %36 = vector.extract_strided_slice %34 {offsets = [0, 8], sizes = [8, 1], strides = [1, 1]} : vector<8x9xf32> to vector<8x1xf32>
    %c0_27 = arith.constant 0 : index
    %c8 = arith.constant 8 : index
    %37 = vector.load %arg14[%c0_27, %c8] : memref<8x128xf32, #tpu.memory_space<vmem>>, vector<8x1xf32>
    tpu.vector_store %arg14[%c0_27, %c8], %36 {strides = array<i32>} : memref<8x128xf32, #tpu.memory_space<vmem>>, vector<8x1xf32>,
    %38 = arith.subf %35, %12 : vector<8x8xf32>
    %39 = arith.mulf %38, %38 : vector<8x8xf32>
    %40 = arith.addf %19, %39 : vector<8x8xf32>
    %41 = arith.addf %18, %35 : vector<8x8xf32>
    %42 = arith.subf %12, %35 : vector<8x8xf32>
    %43 = vector.extract_strided_slice %13 {offsets = [1, 0, 0], sizes = [1, 16, 8], strides = [1, 1, 1]} : vector<3x16x8xf32> to vector<1x16x8xf32>
    %44 = vector.shape_cast %43 : vector<1x16x8xf32> to vector<16x8xf32>
    %cst_28 = arith.constant dense<0.000000e+00> : vector<8x16xf32>
    %45 = tpu.matmul %42, %44, %cst_28 {dimension_numbers = #tpu.dot_dimension_numbers<[1], [1], [0], [0], [0, 0, 1, 0], [], []>} : vector<8x8xf32>, vector<16x8xf32>, vector<8x16xf32> -> vector<8x16xf32>
    %46 = vector.extract_strided_slice %15 {offsets = [1, 0], sizes = [1, 16], strides = [1, 1]} : vector<3x16xf32> to vector<1x16xf32>
    %47 = vector.broadcast %46 : vector<1x16xf32> to vector<8x16xf32>
    %48 = arith.subf %47, %45 : vector<8x16xf32>
    %cst_29 = arith.constant dense<0x7F800000> : vector<8xf32>
    %49 = vector.multi_reduction <minimumf>, %48, %cst_29 [1] : vector<8x16xf32> to vector<8xf32>
    %50 = vector.shape_cast %49 : vector<8xf32> to vector<8x1xf32>
    %51 = vector.broadcast %50 : vector<8x1xf32> to vector<8x16xf32>
    %52 = arith.cmpf oeq, %48, %51 : vector<8x16xf32>
    %53 = arith.extui %52 : vector<8x16xi1> to vector<8x16xi32>
    %54 = arith.sitofp %53 : vector<8x16xi32> to vector<8x16xf32>
    %55 = vector.extract_strided_slice %14 {offsets = [1, 0, 0], sizes = [1, 16, 9], strides = [1, 1, 1]} : vector<3x16x9xf32> to vector<1x16x9xf32>
    %56 = vector.shape_cast %55 : vector<1x16x9xf32> to vector<16x9xf32>
    %cst_30 = arith.constant dense<0.000000e+00> : vector<8x9xf32>
    %57 = tpu.matmul %54, %56, %cst_30 {dimension_numbers = #tpu.dot_dimension_numbers<[1], [0], [0], [1], [0, 0, 1, 1], [], []>} : vector<8x16xf32>, vector<16x9xf32>, vector<8x9xf32> -> vector<8x9xf32>
    %58 = vector.extract_strided_slice %57 {offsets = [0, 0], sizes = [8, 8], strides = [1, 1]} : vector<8x9xf32> to vector<8x8xf32>
    %59 = vector.extract_strided_slice %57 {offsets = [0, 8], sizes = [8, 1], strides = [1, 1]} : vector<8x9xf32> to vector<8x1xf32>
    %c0_31 = arith.constant 0 : index
    %c9 = arith.constant 9 : index
    %60 = vector.load %arg14[%c0_31, %c9] : memref<8x128xf32, #tpu.memory_space<vmem>>, vector<8x1xf32>
    tpu.vector_store %arg14[%c0_31, %c9], %59 {strides = array<i32>} : memref<8x128xf32, #tpu.memory_space<vmem>>, vector<8x1xf32>,
    %61 = arith.subf %58, %42 : vector<8x8xf32>
    %62 = arith.mulf %61, %61 : vector<8x8xf32>
    %63 = arith.addf %40, %62 : vector<8x8xf32>
    %64 = arith.addf %41, %58 : vector<8x8xf32>
    %65 = arith.subf %42, %58 : vector<8x8xf32>
    %66 = vector.extract_strided_slice %13 {offsets = [2, 0, 0], sizes = [1, 16, 8], strides = [1, 1, 1]} : vector<3x16x8xf32> to vector<1x16x8xf32>
    %67 = vector.shape_cast %66 : vector<1x16x8xf32> to vector<16x8xf32>
    %cst_32 = arith.constant dense<0.000000e+00> : vector<8x16xf32>
    %68 = tpu.matmul %65, %67, %cst_32 {dimension_numbers = #tpu.dot_dimension_numbers<[1], [1], [0], [0], [0, 0, 1, 0], [], []>} : vector<8x8xf32>, vector<16x8xf32>, vector<8x16xf32> -> vector<8x16xf32>
    %69 = vector.extract_strided_slice %15 {offsets = [2, 0], sizes = [1, 16], strides = [1, 1]} : vector<3x16xf32> to vector<1x16xf32>
    %70 = vector.broadcast %69 : vector<1x16xf32> to vector<8x16xf32>
    %71 = arith.subf %70, %68 : vector<8x16xf32>
    %cst_33 = arith.constant dense<0x7F800000> : vector<8xf32>
    %72 = vector.multi_reduction <minimumf>, %71, %cst_33 [1] : vector<8x16xf32> to vector<8xf32>
    %73 = vector.shape_cast %72 : vector<8xf32> to vector<8x1xf32>
    %74 = vector.broadcast %73 : vector<8x1xf32> to vector<8x16xf32>
    %75 = arith.cmpf oeq, %71, %74 : vector<8x16xf32>
    %76 = arith.extui %75 : vector<8x16xi1> to vector<8x16xi32>
    %77 = arith.sitofp %76 : vector<8x16xi32> to vector<8x16xf32>
    %78 = vector.extract_strided_slice %14 {offsets = [2, 0, 0], sizes = [1, 16, 9], strides = [1, 1, 1]} : vector<3x16x9xf32> to vector<1x16x9xf32>
    %79 = vector.shape_cast %78 : vector<1x16x9xf32> to vector<16x9xf32>
    %cst_34 = arith.constant dense<0.000000e+00> : vector<8x9xf32>
    %80 = tpu.matmul %77, %79, %cst_34 {dimension_numbers = #tpu.dot_dimension_numbers<[1], [0], [0], [1], [0, 0, 1, 1], [], []>} : vector<8x16xf32>, vector<16x9xf32>, vector<8x9xf32> -> vector<8x9xf32>
    %81 = vector.extract_strided_slice %80 {offsets = [0, 0], sizes = [8, 8], strides = [1, 1]} : vector<8x9xf32> to vector<8x8xf32>
    %82 = vector.extract_strided_slice %80 {offsets = [0, 8], sizes = [8, 1], strides = [1, 1]} : vector<8x9xf32> to vector<8x1xf32>
    %c0_35 = arith.constant 0 : index
    %c10 = arith.constant 10 : index
    %83 = vector.load %arg14[%c0_35, %c10] : memref<8x128xf32, #tpu.memory_space<vmem>>, vector<8x1xf32>
    tpu.vector_store %arg14[%c0_35, %c10], %82 {strides = array<i32>} : memref<8x128xf32, #tpu.memory_space<vmem>>, vector<8x1xf32>,
    %84 = arith.subf %81, %65 : vector<8x8xf32>
    %85 = arith.mulf %84, %84 : vector<8x8xf32>
    %86 = arith.addf %63, %85 : vector<8x8xf32>
    %87 = arith.addf %64, %81 : vector<8x8xf32>
    %c0_36 = arith.constant 0 : index
    %c0_37 = arith.constant 0 : index
    %88 = vector.load %arg14[%c0_36, %c0_37] : memref<8x128xf32, #tpu.memory_space<vmem>>, vector<8x8xf32>
    tpu.vector_store %arg14[%c0_36, %c0_37], %87 {strides = array<i32>} : memref<8x128xf32, #tpu.memory_space<vmem>>, vector<8x8xf32>,
    %cst_38 = arith.constant dense<0.000000e+00> : vector<8xf32>
    %89 = vector.multi_reduction <add>, %86, %cst_38 [1] : vector<8x8xf32> to vector<8xf32>
    %90 = vector.shape_cast %89 : vector<8xf32> to vector<8x1xf32>
    %c0_39 = arith.constant 0 : index
    %c11 = arith.constant 11 : index
    %91 = vector.load %arg14[%c0_39, %c11] : memref<8x128xf32, #tpu.memory_space<vmem>>, vector<8x1xf32>
    tpu.vector_store %arg14[%c0_39, %c11], %90 {strides = array<i32>} : memref<8x128xf32, #tpu.memory_space<vmem>>, vector<8x1xf32>,
    %c0_40 = arith.constant 0 : index
    %c0_41 = arith.constant 0 : index
    %92 = vector.load %arg9[%c0_40, %c0_41] : memref<8x16xf32, #tpu.memory_space<vmem>>, vector<8x16xf32>
    %cst_42 = arith.constant dense<0.000000e+00> : vector<8x16xf32>
    %93 = tpu.matmul %87, %92, %cst_42 {dimension_numbers = #tpu.dot_dimension_numbers<[1], [0], [0], [1], [0, 0, 1, 1], [], []>} : vector<8x8xf32>, vector<8x16xf32>, vector<8x16xf32> -> vector<8x16xf32>
    %c0_43 = arith.constant 0 : index
    %c0_44 = arith.constant 0 : index
    %94 = vector.load %arg10[%c0_43, %c0_44] : memref<1x16xf32, #tpu.memory_space<vmem>>, vector<1x16xf32>
    %95 = vector.broadcast %94 : vector<1x16xf32> to vector<8x16xf32>
    %96 = arith.addf %93, %95 : vector<8x16xf32>
    %cst_45 = arith.constant 0.000000e+00 : f32
    %97 = vector.broadcast %cst_45 : f32 to vector<8x16xf32>
    %98 = arith.maximumf %96, %97 : vector<8x16xf32>
    %c0_46 = arith.constant 0 : index
    %c0_47 = arith.constant 0 : index
    %99 = vector.load %arg11[%c0_46, %c0_47] : memref<16x128xf32, #tpu.memory_space<vmem>>, vector<16x128xf32>
    %cst_48 = arith.constant dense<0.000000e+00> : vector<8x128xf32>
    %100 = tpu.matmul %98, %99, %cst_48 {dimension_numbers = #tpu.dot_dimension_numbers<[1], [0], [0], [1], [0, 0, 1, 1], [], []>} : vector<8x16xf32>, vector<16x128xf32>, vector<8x128xf32> -> vector<8x128xf32>
    %c0_49 = arith.constant 0 : index
    %c0_50 = arith.constant 0 : index
    %101 = vector.load %arg12[%c0_49, %c0_50] : memref<1x128xf32, #tpu.memory_space<vmem>>, vector<1x128xf32>
    %102 = vector.broadcast %101 : vector<1x128xf32> to vector<8x128xf32>
    %103 = arith.addf %100, %102 : vector<8x128xf32>
    %c0_51 = arith.constant 0 : index
    %c0_52 = arith.constant 0 : index
    %104 = vector.load %arg13[%c0_51, %c0_52] : memref<8x128xf32, #tpu.memory_space<vmem>>, vector<8x128xf32>
    tpu.vector_store %arg13[%c0_51, %c0_52], %103 {strides = array<i32>} : memref<8x128xf32, #tpu.memory_space<vmem>>, vector<8x128xf32>,
    return
  }
  func.func @transform_0(%arg0: i32) -> (i32, i32) {
    %c0_i32 = arith.constant 0 : i32
    %c0_i32_0 = arith.constant 0 : i32
    return %arg0, %c0_i32 : i32, i32
  }
  func.func @transform_1(%arg0: i32) -> (i32, i32) {
    %c0_i32 = arith.constant 0 : i32
    %c0_i32_0 = arith.constant 0 : i32
    %c0_i32_1 = arith.constant 0 : i32
    return %c0_i32, %c0_i32_0 : i32, i32
  }
  func.func @transform_2(%arg0: i32) -> (i32, i32) {
    %c0_i32 = arith.constant 0 : i32
    %c0_i32_0 = arith.constant 0 : i32
    %c0_i32_1 = arith.constant 0 : i32
    return %c0_i32, %c0_i32_0 : i32, i32
  }
  func.func @transform_3(%arg0: i32) -> (i32, i32) {
    %c0_i32 = arith.constant 0 : i32
    %c0_i32_0 = arith.constant 0 : i32
    %c0_i32_1 = arith.constant 0 : i32
    return %c0_i32, %c0_i32_0 : i32, i32
  }
  func.func @transform_4(%arg0: i32) -> (i32, i32) {
    %c0_i32 = arith.constant 0 : i32
    %c0_i32_0 = arith.constant 0 : i32
    %c0_i32_1 = arith.constant 0 : i32
    return %c0_i32, %c0_i32_0 : i32, i32
  }
  func.func @transform_5(%arg0: i32) -> (i32, i32, i32) {
    %c0_i32 = arith.constant 0 : i32
    %c0_i32_0 = arith.constant 0 : i32
    %c0_i32_1 = arith.constant 0 : i32
    %c0_i32_2 = arith.constant 0 : i32
    return %c0_i32, %c0_i32_0, %c0_i32_1 : i32, i32, i32
  }
  func.func @transform_6(%arg0: i32) -> (i32, i32, i32) {
    %c0_i32 = arith.constant 0 : i32
    %c0_i32_0 = arith.constant 0 : i32
    %c0_i32_1 = arith.constant 0 : i32
    %c0_i32_2 = arith.constant 0 : i32
    return %c0_i32, %c0_i32_0, %c0_i32_1 : i32, i32, i32
  }
  func.func @transform_7(%arg0: i32) -> (i32, i32) {
    %c0_i32 = arith.constant 0 : i32
    %c0_i32_0 = arith.constant 0 : i32
    %c0_i32_1 = arith.constant 0 : i32
    return %c0_i32, %c0_i32_0 : i32, i32
  }
  func.func @transform_8(%arg0: i32) -> (i32, i32) {
    %c0_i32 = arith.constant 0 : i32
    %c0_i32_0 = arith.constant 0 : i32
    %c0_i32_1 = arith.constant 0 : i32
    return %c0_i32, %c0_i32_0 : i32, i32
  }
  func.func @transform_9(%arg0: i32) -> (i32, i32) {
    %c0_i32 = arith.constant 0 : i32
    %c0_i32_0 = arith.constant 0 : i32
    %c0_i32_1 = arith.constant 0 : i32
    return %c0_i32, %c0_i32_0 : i32, i32
  }
  func.func @transform_10(%arg0: i32) -> (i32, i32) {
    %c0_i32 = arith.constant 0 : i32
    %c0_i32_0 = arith.constant 0 : i32
    %c0_i32_1 = arith.constant 0 : i32
    return %c0_i32, %c0_i32_0 : i32, i32
  }
  func.func @transform_11(%arg0: i32) -> (i32, i32) {
    %c0_i32 = arith.constant 0 : i32
    %c0_i32_0 = arith.constant 0 : i32
    %c0_i32_1 = arith.constant 0 : i32
    return %c0_i32, %c0_i32_0 : i32, i32
  }
  func.func @transform_12(%arg0: i32) -> (i32, i32) {
    %c0_i32 = arith.constant 0 : i32
    %c0_i32_0 = arith.constant 0 : i32
    return %arg0, %c0_i32 : i32, i32
  }
  func.func @transform_13(%arg0: i32) -> (i32, i32) {
    %c0_i32 = arith.constant 0 : i32
    %c0_i32_0 = arith.constant 0 : i32
    return %arg0, %c0_i32 : i32, i32
  }
}

</mosaic_0001>

<bundles_post_ra>
// kernel: tpu_custom_call.1
= control target key start
LH: loop header
LB: loop body
LE: loop exit
PB: predicated region body
PF: predicated region fallthrough
CT: control target
= control target key end

     0   :  { %19 = vsyncpa [#allocation3], 0  ;;  %s696_s0 = inlined_call_operand.vmem [shape: f32[8,32], index: 0, kind: input, shape index: {}]   ;;  %s697_s1 = inlined_call_operand.vmem [shape: f32[32,16], index: 1, kind: input, shape index: {}]   ;;  %s698_s2 = inlined_call_operand.vmem [shape: f32[1,16], index: 2, kind: input, shape index: {}]   ;;  %s699_s3 = inlined_call_operand.vmem [shape: f32[16,8], index: 3, kind: input, shape index: {}]   ;;  %s700_s4 = inlined_call_operand.vmem [shape: f32[1,8], index: 4, kind: input, shape index: {}]   ;;  %s701_s5 = inlined_call_operand.vmem [shape: f32[3,16,8], index: 5, kind: input, shape index: {}]   ;;  %s702_s6 = inlined_call_operand.vmem [shape: f32[3,16,9], index: 6, kind: input, shape index: {}]   ;;  %s703_s7 = inlined_call_operand.vmem [shape: f32[3,16], index: 7, kind: input, shape index: {}]   ;;  %s704_s8 = inlined_call_operand.vmem [shape: f32[8,16], index: 8, kind: input, shape index: {}]   ;;  %s705_s9 = inlined_call_operand.vmem [shape: f32[1,16], index: 9, kind: input, shape index: {}]   ;;  %s706_s10 = inlined_call_operand.vmem [shape: f32[16,128], index: 10, kind: input, shape index: {}]   ;;  %s707_s11 = inlined_call_operand.vmem [shape: f32[1,128], index: 11, kind: input, shape index: {}]   ;;  %s708_s12 = inlined_call_operand.hbm [shape: f32[8,128], index: 12, kind: output, shape index: {0}]   ;;  %s709_s13 = inlined_call_operand.hbm [shape: f32[8,128], index: 13, kind: output, shape index: {1}]  }
   0x1   :  { %v49_v0 = vld [vmem:[%s697_s1 + $0x18] sm:$0xff]  ;;  %v48_v1 = vld [vmem:[%s697_s1 + $0x10] sm:$0xff]  ;;  %v47_v2 = vld [vmem:[%s697_s1 + $0x8] sm:$0xff] }
   0x2   :  { %70 = vmatpush.msra.mxu0 %v49_v0 }
   0x4   :  { %71 = vmatpush.msra.mxu0 %v48_v1 }
   0x5   :  { %20 = vsyncpa [#allocation5], 0  ;;  %v46_v3 = vld [vmem:[%s697_s1] sm:$0xff]  ;;  %vm54_vm0 = vcmask 261120   ;;  %v80_v5 = vld [vmem:[%s699_s3 + $0x8] sm:$0xff]  ;;  %vm123_vm1 = vcmask 64512  }
   0x6   :  { %72 = vmatpush.msra.mxu0 %v47_v2  ;;  %v45_v4 = vld [vmem:[%s696_s0] sm:$0xff]  ;;  %103 = vmatpush.msra.mxu1 %v80_v5  ;;  %v110_v7 = vld [vmem:[%s701_s5 + $0x8] sm:$0xff]  ;;  %vm85_vm2 = vcmask 130048   ;;  %v509_v17 = vmov 0.0   ;;  %v112_v24 = vld [vmem:[%s701_s5 + $0x18] sm:$0xff]  ;;  %vm184_vm4 = vcmask 72768  }
   0x7   :  { %v79_v6 = vld [vmem:[%s699_s3] sm:$0xff]  ;;  %431 = vmatpush.xpose.msk.msra.mxu2 %vm123_vm1, %v110_v7  ;;  %v116_v16 = vld [vmem:[%s702_s6 + $0x8] sm:$0xff]  ;;  %122 = vst [vmem:[#allocation4] sm:$0xff] %v509_v17  ;;  %v111_v25 = vld [vmem:[%s701_s5 + $0x10] sm:$0xff]  ;;  %vm255_vm7 = vcmask 80968   ;;  %vm326_vm8 = vcmask 89168  }
   0x8   :  { %73 = vmatpush.msra.mxu0 %v46_v3  ;;  %104 = vmatpush.msra.mxu1 %v79_v6  ;;  %v453_v8 = vld [vmem:[%s698_s2] ss:$0 sm:$0xff]  ;;  %v118_v30 = vld [vmem:[%s702_s6 + $0x18] sm:$0xff]  ;;  %v117_v31 = vld [vmem:[%s702_s6 + $0x10] sm:$0xff]  ;;  %s512_s14 = smov [#allocation4]   ;;  %vm336_vm9 = vcmask 97368  }
   0x9   :  { %429 = vmatmul.msk.f32.vlgmr.msra.gmra.mxu0 %vm54_vm0, %v45_v4  ;;  %v109_v12 = vld [vmem:[%s701_s5] sm:$0xff]  ;;  %178 = vmatpush.msra.mxu3 %v116_v16  ;;  %v114_v36 = vld [vmem:[%s701_s5 + $0x28] sm:$0xff]  ;;  %s413_s15 = sshll.u32 %s512_s14, 4  ;;  %s404_s22 = sshll.u32 %s708_s12, 4  ;;  %s414_s15 = int_to_ptr.vmem [resolvable:$true] %s413_s15  ;;  %s405_s22 = int_to_ptr.hbm [resolvable:$true] %s404_s22 }
   0xa   :  { %v454_v13 = vld [vmem:[%s700_s4] ss:$0 sm:$0xff]  ;;  %436 = vmatpush.xpose.msk.msrb.mxu1 %vm123_vm1, %v112_v24  ;;  %441 = vmatpush.xpose.msk.msrb.mxu0 %vm123_vm1, %v114_v36  ;;  %v120_v43 = vld [vmem:[%s702_s6 + $0x28] sm:$0xff] }
   0xb   :  { %432 = vmatpush.xpose.msk.msra.mxu2 %vm123_vm1, %v109_v12  ;;  %v121_v18 = vld [vmem:[%s703_s7] sm:$0x7]  ;;  %v368_v0 = vld [vmem:[%s706_s10 + $0x8] sm:$0xff]  ;;  %s415_s7 = sshll.u32 %s709_s13, 4  ;;  %s416_s7 = int_to_ptr.hbm [resolvable:$true] %s415_s7 }
   0xc   :  { %v153_v19 = vperm.slane %v121_v18, 0  ;;  %v115_v23 = vld [vmem:[%s702_s6] sm:$0xff]  ;;  %v220_v32 = vperm.slane %v121_v18, 1  ;;  %v291_v42 = vperm.slane %v121_v18, 2 }
   0xd   :  { %179 = vmatpush.msra.mxu3 %v115_v23  ;;  %v113_v37 = vld [vmem:[%s701_s5 + $0x20] sm:$0xff]  ;;  %s510_s5 = smov 1  }
   0xe   :  { %437 = vmatpush.xpose.msk.msrb.mxu1 %vm123_vm1, %v111_v25  ;;  %442 = vmatpush.xpose.msk.msrb.mxu0 %vm123_vm1, %v113_v37  ;;  %v119_v44 = vld [vmem:[%s702_s6 + $0x20] sm:$0xff]  ;;  %s511_s6 = smov 2  }
   0xf   :  { %245 = vmatpush.msrb.mxu3 %v118_v30  ;;  %316 = vmatpush.msrb.mxu2 %v120_v43  ;;  %v338_v48 = vld [vmem:[%s704_s8] sm:$0xff] }
  0x10   :  { %v367_v2 = vld [vmem:[%s706_s10] sm:$0xff] }
  0x11   :  { %246 = vmatpush.msrb.mxu3 %v117_v31  ;;  %317 = vmatpush.msrb.mxu2 %v119_v44  ;;  %v455_v3 = vld [vmem:[%s705_s9] ss:$0 sm:$0xff]  ;;  %s513_s9 = smov [#allocation2]  }
  0x12   :  { %s402_s19 = sshll.u32 %s513_s9, 4  ;;  %s403_s19 = int_to_ptr.vmem [resolvable:$true] %s402_s19 }
  0x86   :  { %v75_v9 = vpop.f32.mrf.mxu0 }
  0x87   :  { %v76_v10 = vadd.f32 %v453_v8, %v75_v9  ;;  %v456_v8 = vld [vmem:[%s707_s11] ss:$0 sm:$0xff] }
  0x89   :  { %v78_v11 = vmax.f32 %v76_v10, 0.0 }
  0x8b   :  { %430 = vmatmul.msk.f32.vlgmr.msra.gmra.mxu1 %vm85_vm2, %v78_v11 }
  0x8c   :  { %361 = vmatpush.msra.mxu1 %v338_v48 }
 0x108   :  { %v106_v14 = vpop.f32.mrf.mxu1 }
 0x109   :  { %v620_v15 = vadd.f32 %v454_v13, %v106_v14 }
 0x10b   :  { %433 = vmatmul.msk.f32.vlgmr.msra.gmra.mxu2 %vm123_vm1, %v620_v15 }
 0x18e   :  { %v150_v20 = vpop.f32.mrf.mxu2 }
 0x18f   :  { %v154_v21 = vsub.f32 %v153_v19, %v150_v20 }
 0x191   :  { %v155_v22 = vsel %vm85_vm2, %v154_v21, inf }
 0x192   :  { %156 = vmin.xlane.f32.xlu0 %v155_v22 }
 0x205   :  { %v157_v26 = vpop.xlane.xlu0 %156 }
 0x206   :  { %vm158_vm3 = vcmp.eq.f32.partialorder %v154_v21, %v157_v26 }
 0x207   :  { %v434_v27 = vsel %vm158_vm3, 1.0, %v509_v17 }
 0x208   :  { %435 = vmatmul.msk.f32.vlgmr.msra.gmra.mxu3 %vm85_vm2, %v434_v27 }
 0x209   :  { %390 = vmatpush.msra.mxu3 %v368_v0 }
 0x20b   :  { %391 = vmatpush.msra.mxu3 %v367_v2 }
 0x28b   :  { %v181_v28 = vpop.f32.mrf.mxu3 }
 0x28c   :  { %v190_v29 = vsub.f32 %v620_v15, %v181_v28  ;;  %185 = vst.msk [vmem:[#allocation4] sm:$0xff] %vm184_vm4, %v181_v28  ;;  %v186_v56 = vsub.f32 %v181_v28, %v620_v15 }
 0x28e   :  { %438 = vmatmul.msk.f32.vlgmr.msrb.gmra.mxu1 %vm123_vm1, %v190_v29  ;;  %v187_v59 = vmul.f32 %v186_v56, %v186_v56 }
 0x30b   :  { %v217_v33 = vpop.f32.mrf.mxu1 }
 0x30c   :  { %v221_v34 = vsub.f32 %v220_v32, %v217_v33 }
 0x30e   :  { %v222_v35 = vsel %vm85_vm2, %v221_v34, inf }
 0x30f   :  { %223 = vmin.xlane.f32.xlu0 %v222_v35 }
 0x382   :  { %v224_v38 = vpop.xlane.xlu0 %223 }
 0x383   :  { %vm225_vm5 = vcmp.eq.f32.partialorder %v221_v34, %v224_v38 }
 0x384   :  { %v439_v39 = vsel %vm225_vm5, 1.0, %v509_v17 }
 0x385   :  { %440 = vmatmul.msk.f32.vlgmr.msrb.gmra.mxu3 %vm85_vm2, %v439_v39 }
 0x408   :  { %v248_v40 = vpop.f32.mrf.mxu3 }
 0x409   :  { %v261_v41 = vsub.f32 %v190_v29, %v248_v40  ;;  %v260_v52 = vadd.f32 %v248_v40, %v181_v28  ;;  %v257_v55 = vsub.f32 %v248_v40, %v190_v29 }
 0x40b   :  { %443 = vmatmul.msk.f32.vlgmr.msrb.gmra.mxu0 %vm123_vm1, %v261_v41  ;;  %v258_v58 = vmul.f32 %v257_v55, %v257_v55 }
 0x40d   :  { %v259_v61 = vadd.f32 %v258_v58, %v187_v59 }
 0x488   :  { %v288_v45 = vpop.f32.mrf.mxu0 }
 0x489   :  { %v292_v46 = vsub.f32 %v291_v42, %v288_v45 }
 0x48b   :  { %v293_v47 = vsel %vm85_vm2, %v292_v46, inf }
 0x48c   :  { %294 = vmin.xlane.f32.xlu1 %v293_v47 }
 0x4a5   :  { %252 = vrot.lane.b32.xlu1 %v248_v40, %s510_s5 }
 0x4ff   :  { %v295_v49 = vpop.xlane.xlu1 %294 }
 0x500   :  { %vm296_vm6 = vcmp.eq.f32.partialorder %v292_v46, %v295_v49 }
 0x501   :  { %v444_v50 = vsel %vm296_vm6, 1.0, %v509_v17 }
 0x502   :  { %445 = vmatmul.msk.f32.vlgmr.msrb.gmra.mxu2 %vm85_vm2, %v444_v50 }
 0x517   :  { %v253_v51 = vpop.permute.xlu1 %252 }
 0x518   :  { %256 = vst.msk [vmem:[#allocation4] sm:$0xff] %vm255_vm7, %v253_v51 }
 0x585   :  { %v319_v53 = vpop.f32.mrf.mxu2 }
 0x586   :  { %v331_v54 = vadd.f32 %v319_v53, %v260_v52  ;;  %323 = vrot.lane.b32.xlu2 %v319_v53, %s511_s6  ;;  %v328_v57 = vsub.f32 %v319_v53, %v261_v41 }
 0x588   :  { %446 = vmatmul.msk.f32.vlgmr.msra.gmra.mxu1 %vm123_vm1, %v331_v54  ;;  %v329_v60 = vmul.f32 %v328_v57, %v328_v57 }
 0x58a   :  { %v330_v62 = vadd.f32 %v329_v60, %v259_v61 }
 0x58c   :  { %v333_v63 = vsel %vm123_vm1, %v330_v62, 0.0 }
 0x5af   :  { %334 = vadd.xlane.f32.xlu2 %v333_v63 }
 0x5e0   :  { %v324_v1 = vpop.permute.xlu2 %323 }
 0x5e1   :  { %327 = vst.msk [vmem:[#allocation4] sm:$0xff] %vm326_vm8, %v324_v1 }
 0x5e2   :  { %332 = vst.msk [vmem:[#allocation4] sm:$0xff] %vm123_vm1, %v331_v54 }
 0x605   :  { %v363_v4 = vpop.f32.mrf.mxu1 }
 0x606   :  { %v364_v5 = vadd.f32 %v455_v3, %v363_v4 }
 0x608   :  { %v366_v6 = vmax.f32 %v364_v5, 0.0 }
 0x60a   :  { %447 = vmatmul.msk.f32.vlgmr.msra.gmra.mxu3 %vm85_vm2, %v366_v6 }
 0x622   :  { %v335_v7 = vpop.xlane.xlu2 %334 }
 0x623   :  { %337 = vst.msk [vmem:[#allocation4] sm:$0xff] %vm336_vm9, %v335_v7 }
 0x624   :  { %418 = dma.vmem_to_hbm [thread:$0]  %s414_s15, 128, %s416_s7, [#allocation5]  }
 0x68d   :  { %v393_v9 = vpop.f32.mrf.mxu3 }
 0x68e   :  { %v394_v10 = vadd.f32 %v456_v8, %v393_v9 }
 0x690   :  { %396 = vst [vmem:[#allocation2] sm:$0xff] %v394_v10 }
 0x691   :  { %407 = dma.vmem_to_hbm [thread:$0]  %s403_s19, 128, %s405_s22, [#allocation3]  }
 0x692   :  { %505 = dma.done.wait [#allocation3], 128  }
 0x693   :  { %506 = vsyncadd [#allocation3], 4294967168 }
 0x694   :  { %507 = dma.done.wait [#allocation5], 128  }
 0x695   :  { %508 = vsyncadd [#allocation5], 4294967168 }
 0x696   :  { %427 = vsyncpa [#allocation3], 1 }
 0x697   :  { %428 = vsyncpa [#allocation5], 1 }

// kernel: tpu_custom_call.1
= control target key start
LH: loop header
LB: loop body
LE: loop exit
PB: predicated region body
PF: predicated region fallthrough
CT: control target
= control target key end

     0   :  { %19 = vsyncpa [#allocation3], 0  ;;  %s696_s0 = inlined_call_operand.vmem [shape: f32[8,32], index: 0, kind: input, shape index: {}]   ;;  %s697_s1 = inlined_call_operand.vmem [shape: f32[32,16], index: 1, kind: input, shape index: {}]   ;;  %s698_s2 = inlined_call_operand.vmem [shape: f32[1,16], index: 2, kind: input, shape index: {}]   ;;  %s699_s3 = inlined_call_operand.vmem [shape: f32[16,8], index: 3, kind: input, shape index: {}]   ;;  %s700_s4 = inlined_call_operand.vmem [shape: f32[1,8], index: 4, kind: input, shape index: {}]   ;;  %s701_s5 = inlined_call_operand.vmem [shape: f32[3,16,8], index: 5, kind: input, shape index: {}]   ;;  %s702_s6 = inlined_call_operand.vmem [shape: f32[3,16,9], index: 6, kind: input, shape index: {}]   ;;  %s703_s7 = inlined_call_operand.vmem [shape: f32[3,16], index: 7, kind: input, shape index: {}]   ;;  %s704_s8 = inlined_call_operand.vmem [shape: f32[8,16], index: 8, kind: input, shape index: {}]   ;;  %s705_s9 = inlined_call_operand.vmem [shape: f32[1,16], index: 9, kind: input, shape index: {}]   ;;  %s706_s10 = inlined_call_operand.vmem [shape: f32[16,128], index: 10, kind: input, shape index: {}]   ;;  %s707_s11 = inlined_call_operand.vmem [shape: f32[1,128], index: 11, kind: input, shape index: {}]   ;;  %s708_s12 = inlined_call_operand.hbm [shape: f32[8,128], index: 12, kind: output, shape index: {0}]   ;;  %s709_s13 = inlined_call_operand.hbm [shape: f32[8,128], index: 13, kind: output, shape index: {1}]  }
   0x1   :  { %v49_v0 = vld [vmem:[%s697_s1 + $0x18] sm:$0xff]  ;;  %v48_v1 = vld [vmem:[%s697_s1 + $0x10] sm:$0xff]  ;;  %v47_v2 = vld [vmem:[%s697_s1 + $0x8] sm:$0xff] }
   0x2   :  { %70 = vmatpush.msra.mxu0 %v49_v0 }
   0x4   :  { %71 = vmatpush.msra.mxu0 %v48_v1 }
   0x5   :  { %20 = vsyncpa [#allocation5], 0  ;;  %v46_v3 = vld [vmem:[%s697_s1] sm:$0xff]  ;;  %vm54_vm0 = vcmask 261120   ;;  %v80_v5 = vld [vmem:[%s699_s3 + $0x8] sm:$0xff]  ;;  %vm123_vm1 = vcmask 64512  }
   0x6   :  { %72 = vmatpush.msra.mxu0 %v47_v2  ;;  %v45_v4 = vld [vmem:[%s696_s0] sm:$0xff]  ;;  %103 = vmatpush.msra.mxu1 %v80_v5  ;;  %v110_v7 = vld [vmem:[%s701_s5 + $0x8] sm:$0xff]  ;;  %vm85_vm2 = vcmask 130048   ;;  %v509_v17 = vmov 0.0   ;;  %v112_v24 = vld [vmem:[%s701_s5 + $0x18] sm:$0xff]  ;;  %vm184_vm4 = vcmask 72768  }
   0x7   :  { %v79_v6 = vld [vmem:[%s699_s3] sm:$0xff]  ;;  %431 = vmatpush.xpose.msk.msra.mxu2 %vm123_vm1, %v110_v7  ;;  %v116_v16 = vld [vmem:[%s702_s6 + $0x8] sm:$0xff]  ;;  %122 = vst [vmem:[#allocation4] sm:$0xff] %v509_v17  ;;  %v111_v25 = vld [vmem:[%s701_s5 + $0x10] sm:$0xff]  ;;  %vm255_vm7 = vcmask 80968   ;;  %vm326_vm8 = vcmask 89168  }
   0x8   :  { %73 = vmatpush.msra.mxu0 %v46_v3  ;;  %104 = vmatpush.msra.mxu1 %v79_v6  ;;  %v453_v8 = vld [vmem:[%s698_s2] ss:$0 sm:$0xff]  ;;  %v118_v30 = vld [vmem:[%s702_s6 + $0x18] sm:$0xff]  ;;  %v117_v31 = vld [vmem:[%s702_s6 + $0x10] sm:$0xff]  ;;  %s512_s14 = smov [#allocation4]   ;;  %vm336_vm9 = vcmask 97368  }
   0x9   :  { %429 = vmatmul.msk.f32.vlgmr.msra.gmra.mxu0 %vm54_vm0, %v45_v4  ;;  %v109_v12 = vld [vmem:[%s701_s5] sm:$0xff]  ;;  %178 = vmatpush.msra.mxu3 %v116_v16  ;;  %v114_v36 = vld [vmem:[%s701_s5 + $0x28] sm:$0xff]  ;;  %s413_s15 = sshll.u32 %s512_s14, 4  ;;  %s404_s22 = sshll.u32 %s708_s12, 4  ;;  %s414_s15 = int_to_ptr.vmem [resolvable:$true] %s413_s15  ;;  %s405_s22 = int_to_ptr.hbm [resolvable:$true] %s404_s22 }
   0xa   :  { %v454_v13 = vld [vmem:[%s700_s4] ss:$0 sm:$0xff]  ;;  %436 = vmatpush.xpose.msk.msrb.mxu1 %vm123_vm1, %v112_v24  ;;  %441 = vmatpush.xpose.msk.msrb.mxu0 %vm123_vm1, %v114_v36  ;;  %v120_v43 = vld [vmem:[%s702_s6 + $0x28] sm:$0xff] }
   0xb   :  { %432 = vmatpush.xpose.msk.msra.mxu2 %vm123_vm1, %v109_v12  ;;  %v121_v18 = vld [vmem:[%s703_s7] sm:$0x7]  ;;  %v368_v0 = vld [vmem:[%s706_s10 + $0x8] sm:$0xff]  ;;  %s415_s7 = sshll.u32 %s709_s13, 4  ;;  %s416_s7 = int_to_ptr.hbm [resolvable:$true] %s415_s7 }
   0xc   :  { %v153_v19 = vperm.slane %v121_v18, 0  ;;  %v115_v23 = vld [vmem:[%s702_s6] sm:$0xff]  ;;  %v220_v32 = vperm.slane %v121_v18, 1  ;;  %v291_v42 = vperm.slane %v121_v18, 2 }
   0xd   :  { %179 = vmatpush.msra.mxu3 %v115_v23  ;;  %v113_v37 = vld [vmem:[%s701_s5 + $0x20] sm:$0xff]  ;;  %s510_s5 = smov 1  }
   0xe   :  { %437 = vmatpush.xpose.msk.msrb.mxu1 %vm123_vm1, %v111_v25  ;;  %442 = vmatpush.xpose.msk.msrb.mxu0 %vm123_vm1, %v113_v37  ;;  %v119_v44 = vld [vmem:[%s702_s6 + $0x20] sm:$0xff]  ;;  %s511_s6 = smov 2  }
   0xf   :  { %245 = vmatpush.msrb.mxu3 %v118_v30  ;;  %316 = vmatpush.msrb.mxu2 %v120_v43  ;;  %v338_v48 = vld [vmem:[%s704_s8] sm:$0xff] }
  0x10   :  { %v367_v2 = vld [vmem:[%s706_s10] sm:$0xff] }
  0x11   :  { %246 = vmatpush.msrb.mxu3 %v117_v31  ;;  %317 = vmatpush.msrb.mxu2 %v119_v44  ;;  %v455_v3 = vld [vmem:[%s705_s9] ss:$0 sm:$0xff]  ;;  %s513_s9 = smov [#allocation2]  }
  0x12   :  { %s402_s19 = sshll.u32 %s513_s9, 4  ;;  %s403_s19 = int_to_ptr.vmem [resolvable:$true] %s402_s19 }
  0x86   :  { %v75_v9 = vpop.f32.mrf.mxu0 }
  0x87   :  { %v76_v10 = vadd.f32 %v453_v8, %v75_v9  ;;  %v456_v8 = vld [vmem:[%s707_s11] ss:$0 sm:$0xff] }
  0x89   :  { %v78_v11 = vmax.f32 %v76_v10, 0.0 }
  0x8b   :  { %430 = vmatmul.msk.f32.vlgmr.msra.gmra.mxu1 %vm85_vm2, %v78_v11 }
  0x8c   :  { %361 = vmatpush.msra.mxu1 %v338_v48 }
 0x108   :  { %v106_v14 = vpop.f32.mrf.mxu1 }
 0x109   :  { %v620_v15 = vadd.f32 %v454_v13, %v106_v14 }
 0x10b   :  { %433 = vmatmul.msk.f32.vlgmr.msra.gmra.mxu2 %vm123_vm1, %v620_v15 }
 0x18e   :  { %v150_v20 = vpop.f32.mrf.mxu2 }
 0x18f   :  { %v154_v21 = vsub.f32 %v153_v19, %v150_v20 }
 0x191   :  { %v155_v22 = vsel %vm85_vm2, %v154_v21, inf }
 0x192   :  { %156 = vmin.xlane.f32.xlu0 %v155_v22 }
 0x205   :  { %v157_v26 = vpop.xlane.xlu0 %156 }
 0x206   :  { %vm158_vm3 = vcmp.eq.f32.partialorder %v154_v21, %v157_v26 }
 0x207   :  { %v434_v27 = vsel %vm158_vm3, 1.0, %v509_v17 }
 0x208   :  { %435 = vmatmul.msk.f32.vlgmr.msra.gmra.mxu3 %vm85_vm2, %v434_v27 }
 0x209   :  { %390 = vmatpush.msra.mxu3 %v368_v0 }
 0x20b   :  { %391 = vmatpush.msra.mxu3 %v367_v2 }
 0x28b   :  { %v181_v28 = vpop.f32.mrf.mxu3 }
 0x28c   :  { %v190_v29 = vsub.f32 %v620_v15, %v181_v28  ;;  %185 = vst.msk [vmem:[#allocation4] sm:$0xff] %vm184_vm4, %v181_v28  ;;  %v186_v56 = vsub.f32 %v181_v28, %v620_v15 }
 0x28e   :  { %438 = vmatmul.msk.f32.vlgmr.msrb.gmra.mxu1 %vm123_vm1, %v190_v29  ;;  %v187_v59 = vmul.f32 %v186_v56, %v186_v56 }
 0x30b   :  { %v217_v33 = vpop.f32.mrf.mxu1 }
 0x30c   :  { %v221_v34 = vsub.f32 %v220_v32, %v217_v33 }
 0x30e   :  { %v222_v35 = vsel %vm85_vm2, %v221_v34, inf }
 0x30f   :  { %223 = vmin.xlane.f32.xlu0 %v222_v35 }
 0x382   :  { %v224_v38 = vpop.xlane.xlu0 %223 }
 0x383   :  { %vm225_vm5 = vcmp.eq.f32.partialorder %v221_v34, %v224_v38 }
 0x384   :  { %v439_v39 = vsel %vm225_vm5, 1.0, %v509_v17 }
 0x385   :  { %440 = vmatmul.msk.f32.vlgmr.msrb.gmra.mxu3 %vm85_vm2, %v439_v39 }
 0x408   :  { %v248_v40 = vpop.f32.mrf.mxu3 }
 0x409   :  { %v261_v41 = vsub.f32 %v190_v29, %v248_v40  ;;  %v260_v52 = vadd.f32 %v248_v40, %v181_v28  ;;  %v257_v55 = vsub.f32 %v248_v40, %v190_v29 }
 0x40b   :  { %443 = vmatmul.msk.f32.vlgmr.msrb.gmra.mxu0 %vm123_vm1, %v261_v41  ;;  %v258_v58 = vmul.f32 %v257_v55, %v257_v55 }
 0x40d   :  { %v259_v61 = vadd.f32 %v258_v58, %v187_v59 }
 0x488   :  { %v288_v45 = vpop.f32.mrf.mxu0 }
 0x489   :  { %v292_v46 = vsub.f32 %v291_v42, %v288_v45 }
 0x48b   :  { %v293_v47 = vsel %vm85_vm2, %v292_v46, inf }
 0x48c   :  { %294 = vmin.xlane.f32.xlu1 %v293_v47 }
 0x4a5   :  { %252 = vrot.lane.b32.xlu1 %v248_v40, %s510_s5 }
 0x4ff   :  { %v295_v49 = vpop.xlane.xlu1 %294 }
 0x500   :  { %vm296_vm6 = vcmp.eq.f32.partialorder %v292_v46, %v295_v49 }
 0x501   :  { %v444_v50 = vsel %vm296_vm6, 1.0, %v509_v17 }
 0x502   :  { %445 = vmatmul.msk.f32.vlgmr.msrb.gmra.mxu2 %vm85_vm2, %v444_v50 }
 0x517   :  { %v253_v51 = vpop.permute.xlu1 %252 }
 0x518   :  { %256 = vst.msk [vmem:[#allocation4] sm:$0xff] %vm255_vm7, %v253_v51 }
 0x585   :  { %v319_v53 = vpop.f32.mrf.mxu2 }
 0x586   :  { %v331_v54 = vadd.f32 %v319_v53, %v260_v52  ;;  %323 = vrot.lane.b32.xlu2 %v319_v53, %s511_s6  ;;  %v328_v57 = vsub.f32 %v319_v53, %v261_v41 }
 0x588   :  { %446 = vmatmul.msk.f32.vlgmr.msra.gmra.mxu1 %vm123_vm1, %v331_v54  ;;  %v329_v60 = vmul.f32 %v328_v57, %v328_v57 }
 0x58a   :  { %v330_v62 = vadd.f32 %v329_v60, %v259_v61 }
 0x58c   :  { %v333_v63 = vsel %vm123_vm1, %v330_v62, 0.0 }
 0x5af   :  { %334 = vadd.xlane.f32.xlu2 %v333_v63 }
 0x5e0   :  { %v324_v1 = vpop.permute.xlu2 %323 }
 0x5e1   :  { %327 = vst.msk [vmem:[#allocation4] sm:$0xff] %vm326_vm8, %v324_v1 }
 0x5e2   :  { %332 = vst.msk [vmem:[#allocation4] sm:$0xff] %vm123_vm1, %v331_v54 }
 0x605   :  { %v363_v4 = vpop.f32.mrf.mxu1 }
 0x606   :  { %v364_v5 = vadd.f32 %v455_v3, %v363_v4 }
 0x608   :  { %v366_v6 = vmax.f32 %v364_v5, 0.0 }
 0x60a   :  { %447 = vmatmul.msk.f32.vlgmr.msra.gmra.mxu3 %vm85_vm2, %v366_v6 }
 0x622   :  { %v335_v7 = vpop.xlane.xlu2 %334 }
 0x623   :  { %337 = vst.msk [vmem:[#allocation4] sm:$0xff] %vm336_vm9, %v335_v7 }
 0x624   :  { %418 = dma.vmem_to_hbm [thread:$0]  %s414_s15, 128, %s416_s7, [#allocation5]  }
 0x68d   :  { %v393_v9 = vpop.f32.mrf.mxu3 }
 0x68e   :  { %v394_v10 = vadd.f32 %v456_v8, %v393_v9 }
 0x690   :  { %396 = vst [vmem:[#allocation2] sm:$0xff] %v394_v10 }
 0x691   :  { %407 = dma.vmem_to_hbm [thread:$0]  %s403_s19, 128, %s405_s22, [#allocation3]  }
 0x692   :  { %505 = dma.done.wait [#allocation3], 128  }
 0x693   :  { %506 = vsyncadd [#allocation3], 4294967168 }
 0x694   :  { %507 = dma.done.wait [#allocation5], 128  }
 0x695   :  { %508 = vsyncadd [#allocation5], 4294967168 }
 0x696   :  { %427 = vsyncpa [#allocation3], 1 }
 0x697   :  { %428 = vsyncpa [#allocation5], 1 }

</bundles_post_ra>
